<compile_context>
chip_gen: v5e
topology: v5e:2x2
jax: 0.10.0
libtpu: 0.0.40
codegen_flags: <defaults>
</compile_context>

<pallas_src>
import functools

import jax
import jax.numpy as jnp
from jax.experimental import pallas as pl
from jax.experimental.pallas import tpu as pltpu


_N_INFLIGHT = 8  # concurrent row DMAs per token block (review: 8-16, >=2 slots)


def _gather_kernel(ids_ref, emb_hbm, out_ref, sems, *, block_tokens, n_slots):
    """Per-token row DMA gather from the HBM embedding table into the output tile.

    ids_ref : SMEM int32[n_tokens_padded]     scalar-prefetched token ids
    emb_hbm : ANY/HBM [n_vocab, d_model]      full table, no auto-DMA
    out_ref : VMEM [block_tokens, d_model]    output tile for this grid step
    sems    : DMA semaphores [n_slots]        rotating in-flight slots
    """
    base = pl.program_id(0) * block_tokens

    def start(k):
        tok = ids_ref[base + k]
        pltpu.make_async_copy(
            emb_hbm.at[tok], out_ref.at[k], sems.at[k % n_slots]
        ).start()

    def wait(k):
        # All copies have identical (d_model,) shape, so any same-shaped descriptor
        # on the right semaphore is a valid wait (same pattern as paged attention).
        pltpu.make_async_copy(
            emb_hbm.at[0], out_ref.at[k], sems.at[k % n_slots]
        ).wait()

    # Prime the pipeline with up to n_slots copies in flight.
    for k in range(min(n_slots, block_tokens)):
        start(k)

    @pl.loop(0, block_tokens)
    def _(k):
        wait(k)

        @pl.when(k + n_slots < block_tokens)
        def _():
            start(k + n_slots)


def _pick_block_tokens(d_model, itemsize, *, max_tokens=256, out_tile_budget=4 << 20):
    """Largest multiple of 8 <= max_tokens whose output tile fits the VMEM budget."""
    bt = max(8, min(max_tokens, out_tile_budget // max(1, d_model * itemsize)))
    return (bt // 8) * 8


def token_embedding(ids_flat, emb_table, *, block_tokens=None):
    """ids_flat: int[n_tokens], emb_table: [n_vocab, d_model] -> [n_tokens, d_model]."""
    n_tokens = ids_flat.shape[0]
    n_vocab, d_model = emb_table.shape
    itemsize = jnp.dtype(emb_table.dtype).itemsize

    if block_tokens is None:
        block_tokens = _pick_block_tokens(d_model, itemsize)
    # Never make the tile bigger than the (sublane-rounded) token count.
    block_tokens = min(block_tokens, max(8, pl.cdiv(n_tokens, 8) * 8))

    padded = pl.cdiv(n_tokens, block_tokens) * block_tokens
    # Clamp to valid range (torch raises on OOB ids; clamping avoids OOB DMAs) and
    # pad with id 0 (padded rows gather row 0 and are sliced off below).
    ids = jnp.clip(ids_flat.astype(jnp.int32), 0, n_vocab - 1)
    ids = jnp.pad(ids, (0, padded - n_tokens))

    n_slots = min(_N_INFLIGHT, block_tokens)
    grid = (padded // block_tokens,)

    kernel = functools.partial(
        _gather_kernel, block_tokens=block_tokens, n_slots=n_slots
    )

    out = pl.pallas_call(
        kernel,
        out_shape=jax.ShapeDtypeStruct((padded, d_model), emb_table.dtype),
        grid_spec=pltpu.PrefetchScalarGridSpec(
            num_scalar_prefetch=1,          # ids -> SMEM before the grid runs
            grid=grid,
            in_specs=[pl.BlockSpec(memory_space=pl.ANY)],   # table stays in HBM
            out_specs=pl.BlockSpec((block_tokens, d_model), lambda i, ids: (i, 0)),
            scratch_shapes=[pltpu.SemaphoreType.DMA((n_slots,))],
        ),
        compiler_params=pltpu.CompilerParams(
            # Token blocks are independent -> shard across the 2 TCs on v7x.
            dimension_semantics=("parallel",),
            # Only the double-buffered out tile lives in VMEM (<= ~8 MiB); 32 MiB is
            # comfortably within every generation's per-core budget.
            vmem_limit_bytes=32 * 1024 * 1024,
        ),
    )(ids, emb_table)

    return out[:n_tokens]


class TokenEmbedding:
    """JAX/Pallas port of the PyTorch TokenEmbedding module."""

    def __init__(self, d_model, n_vocab=50000, *, key, dtype=jnp.float32):
        # nn.Embedding default init: weight ~ N(0, 1).
        self.weight = jax.random.normal(
            key, (n_vocab, d_model), dtype=jnp.float32
        ).astype(dtype)
        self.d_model = d_model
        self.n_vocab = n_vocab

    def __call__(self, x):
        # x: int32[B, S] -> out: [B, S, d_model]
        b, s = x.shape
        out_flat = token_embedding(x.reshape(b * s), self.weight)
        return out_flat.reshape(b, s, self.d_model)


if __name__ == "__main__":
    key = jax.random.PRNGKey(0)
    k_tbl, k_ids = jax.random.split(key)

    # Small, forward-consistent shapes: batch=2, seq=8, d_model=128, n_vocab=256.
    batch, seq, d_model, n_vocab = 2, 8, 128, 256

    module = TokenEmbedding(d_model, n_vocab, key=k_tbl)
    x = jax.random.randint(k_ids, (batch, seq), 0, n_vocab, dtype=jnp.int32)

    out = module(x)
    out = jax.block_until_ready(out)

    # Reference check against plain-JAX gather (same semantics as torch embedding).
    ref = jnp.take(module.weight, x, axis=0)
    assert out.shape == (batch, seq, d_model)
    assert jnp.array_equal(out, ref), "mismatch vs. reference gather"

    # Ragged token count: exercises the padding + tile-rounding path.
    ids_ragged = jax.random.randint(
        jax.random.PRNGKey(1), (13,), 0, n_vocab, dtype=jnp.int32
    )
    out2 = jax.block_until_ready(token_embedding(ids_ragged, module.weight))
    assert jnp.array_equal(out2, jnp.take(module.weight, ids_ragged, axis=0))

    print("KERNEL_OK")
</pallas_src>

<mosaic_0001>
module attributes {stable_mosaic.version = 11 : i64} {
  func.func @_gather_kernel(%arg0: i32, %arg1: memref<16xi32, #tpu.memory_space<smem>>, %arg2: memref<256x128xf32, #tpu.memory_space<any>>, %arg3: memref<16x128xf32, #tpu.memory_space<vmem>>, %arg4: memref<8x!tpu.dma_semaphore, #tpu.memory_space<semaphore_mem>>) attributes {dimension_semantics = [#tpu.dimension_semantics<parallel>], iteration_bounds = array<i64: 1>, scalar_prefetch = 1 : i64, scratch_operands = 1 : i64, tpu.core_type = #tpu.core_type<tc>, window_params = [{}, {transform_indices = @transform_1, window_bounds = array<i64: 16, 128>}]} {
    %c16_i32 = arith.constant 16 : i32
    %0 = arith.muli %arg0, %c16_i32 : i32
    %c0_i32 = arith.constant 0 : i32
    %1 = arith.addi %0, %c0_i32 : i32
    %2 = arith.index_cast %1 : i32 to index
    %3 = memref.load %arg1[%2] : memref<16xi32, #tpu.memory_space<smem>>
    %c0_i32_0 = arith.constant 0 : i32
    %c0_i32_1 = arith.constant 0 : i32
    %c0_i32_2 = arith.constant 0 : i32
    %4 = tpu.memref_slice %arg2[%3, %c0_i32_2] : memref<256x128xf32, #tpu.memory_space<any>> -> memref<1x128xf32, #tpu.memory_space<any>>
    %5 = tpu.memref_squeeze %4 : memref<1x128xf32, #tpu.memory_space<any>> -> memref<128xf32, #tpu.memory_space<any>>
    %c0_i32_3 = arith.constant 0 : i32
    %6 = tpu.memref_slice %arg3[%c0_i32_0, %c0_i32_3] : memref<16x128xf32, #tpu.memory_space<vmem>> -> memref<1x128xf32, #tpu.memory_space<vmem>>
    %7 = tpu.memref_squeeze %6 : memref<1x128xf32, #tpu.memory_space<vmem>> -> memref<128xf32, #tpu.memory_space<vmem>>
    %8 = tpu.memref_slice %arg4[%c0_i32_1] : memref<8x!tpu.dma_semaphore, #tpu.memory_space<semaphore_mem>> -> memref<1x!tpu.dma_semaphore, #tpu.memory_space<semaphore_mem>>
    %9 = tpu.memref_squeeze %8 : memref<1x!tpu.dma_semaphore, #tpu.memory_space<semaphore_mem>> -> memref<!tpu.dma_semaphore, #tpu.memory_space<semaphore_mem>>
    tpu.enqueue_dma source(%5 : memref<128xf32, #tpu.memory_space<any>>) target(%7 : memref<128xf32, #tpu.memory_space<vmem>>) target_semaphore(%9 : memref<!tpu.dma_semaphore, #tpu.memory_space<semaphore_mem>>)
    %c1_i32 = arith.constant 1 : i32
    %10 = arith.addi %0, %c1_i32 : i32
    %11 = arith.index_cast %10 : i32 to index
    %12 = memref.load %arg1[%11] : memref<16xi32, #tpu.memory_space<smem>>
    %c1_i32_4 = arith.constant 1 : i32
    %c1_i32_5 = arith.constant 1 : i32
    %c0_i32_6 = arith.constant 0 : i32
    %13 = tpu.memref_slice %arg2[%12, %c0_i32_6] : memref<256x128xf32, #tpu.memory_space<any>> -> memref<1x128xf32, #tpu.memory_space<any>>
    %14 = tpu.memref_squeeze %13 : memref<1x128xf32, #tpu.memory_space<any>> -> memref<128xf32, #tpu.memory_space<any>>
    %c0_i32_7 = arith.constant 0 : i32
    %15 = tpu.memref_slice %arg3[%c1_i32_4, %c0_i32_7] : memref<16x128xf32, #tpu.memory_space<vmem>> -> memref<1x128xf32, #tpu.memory_space<vmem>>
    %16 = tpu.memref_squeeze %15 : memref<1x128xf32, #tpu.memory_space<vmem>> -> memref<128xf32, #tpu.memory_space<vmem>>
    %17 = tpu.memref_slice %arg4[%c1_i32_5] : memref<8x!tpu.dma_semaphore, #tpu.memory_space<semaphore_mem>> -> memref<1x!tpu.dma_semaphore, #tpu.memory_space<semaphore_mem>>
    %18 = tpu.memref_squeeze %17 : memref<1x!tpu.dma_semaphore, #tpu.memory_space<semaphore_mem>> -> memref<!tpu.dma_semaphore, #tpu.memory_space<semaphore_mem>>
    tpu.enqueue_dma source(%14 : memref<128xf32, #tpu.memory_space<any>>) target(%16 : memref<128xf32, #tpu.memory_space<vmem>>) target_semaphore(%18 : memref<!tpu.dma_semaphore, #tpu.memory_space<semaphore_mem>>)
    %c2_i32 = arith.constant 2 : i32
    %19 = arith.addi %0, %c2_i32 : i32
    %20 = arith.index_cast %19 : i32 to index
    %21 = memref.load %arg1[%20] : memref<16xi32, #tpu.memory_space<smem>>
    %c2_i32_8 = arith.constant 2 : i32
    %c2_i32_9 = arith.constant 2 : i32
    %c0_i32_10 = arith.constant 0 : i32
    %22 = tpu.memref_slice %arg2[%21, %c0_i32_10] : memref<256x128xf32, #tpu.memory_space<any>> -> memref<1x128xf32, #tpu.memory_space<any>>
    %23 = tpu.memref_squeeze %22 : memref<1x128xf32, #tpu.memory_space<any>> -> memref<128xf32, #tpu.memory_space<any>>
    %c0_i32_11 = arith.constant 0 : i32
    %24 = tpu.memref_slice %arg3[%c2_i32_8, %c0_i32_11] : memref<16x128xf32, #tpu.memory_space<vmem>> -> memref<1x128xf32, #tpu.memory_space<vmem>>
    %25 = tpu.memref_squeeze %24 : memref<1x128xf32, #tpu.memory_space<vmem>> -> memref<128xf32, #tpu.memory_space<vmem>>
    %26 = tpu.memref_slice %arg4[%c2_i32_9] : memref<8x!tpu.dma_semaphore, #tpu.memory_space<semaphore_mem>> -> memref<1x!tpu.dma_semaphore, #tpu.memory_space<semaphore_mem>>
    %27 = tpu.memref_squeeze %26 : memref<1x!tpu.dma_semaphore, #tpu.memory_space<semaphore_mem>> -> memref<!tpu.dma_semaphore, #tpu.memory_space<semaphore_mem>>
    tpu.enqueue_dma source(%23 : memref<128xf32, #tpu.memory_space<any>>) target(%25 : memref<128xf32, #tpu.memory_space<vmem>>) target_semaphore(%27 : memref<!tpu.dma_semaphore, #tpu.memory_space<semaphore_mem>>)
    %c3_i32 = arith.constant 3 : i32
    %28 = arith.addi %0, %c3_i32 : i32
    %29 = arith.index_cast %28 : i32 to index
    %30 = memref.load %arg1[%29] : memref<16xi32, #tpu.memory_space<smem>>
    %c3_i32_12 = arith.constant 3 : i32
    %c3_i32_13 = arith.constant 3 : i32
    %c0_i32_14 = arith.constant 0 : i32
    %31 = tpu.memref_slice %arg2[%30, %c0_i32_14] : memref<256x128xf32, #tpu.memory_space<any>> -> memref<1x128xf32, #tpu.memory_space<any>>
    %32 = tpu.memref_squeeze %31 : memref<1x128xf32, #tpu.memory_space<any>> -> memref<128xf32, #tpu.memory_space<any>>
    %c0_i32_15 = arith.constant 0 : i32
    %33 = tpu.memref_slice %arg3[%c3_i32_12, %c0_i32_15] : memref<16x128xf32, #tpu.memory_space<vmem>> -> memref<1x128xf32, #tpu.memory_space<vmem>>
    %34 = tpu.memref_squeeze %33 : memref<1x128xf32, #tpu.memory_space<vmem>> -> memref<128xf32, #tpu.memory_space<vmem>>
    %35 = tpu.memref_slice %arg4[%c3_i32_13] : memref<8x!tpu.dma_semaphore, #tpu.memory_space<semaphore_mem>> -> memref<1x!tpu.dma_semaphore, #tpu.memory_space<semaphore_mem>>
    %36 = tpu.memref_squeeze %35 : memref<1x!tpu.dma_semaphore, #tpu.memory_space<semaphore_mem>> -> memref<!tpu.dma_semaphore, #tpu.memory_space<semaphore_mem>>
    tpu.enqueue_dma source(%32 : memref<128xf32, #tpu.memory_space<any>>) target(%34 : memref<128xf32, #tpu.memory_space<vmem>>) target_semaphore(%36 : memref<!tpu.dma_semaphore, #tpu.memory_space<semaphore_mem>>)
    %c4_i32 = arith.constant 4 : i32
    %37 = arith.addi %0, %c4_i32 : i32
    %38 = arith.index_cast %37 : i32 to index
    %39 = memref.load %arg1[%38] : memref<16xi32, #tpu.memory_space<smem>>
    %c4_i32_16 = arith.constant 4 : i32
    %c4_i32_17 = arith.constant 4 : i32
    %c0_i32_18 = arith.constant 0 : i32
    %40 = tpu.memref_slice %arg2[%39, %c0_i32_18] : memref<256x128xf32, #tpu.memory_space<any>> -> memref<1x128xf32, #tpu.memory_space<any>>
    %41 = tpu.memref_squeeze %40 : memref<1x128xf32, #tpu.memory_space<any>> -> memref<128xf32, #tpu.memory_space<any>>
    %c0_i32_19 = arith.constant 0 : i32
    %42 = tpu.memref_slice %arg3[%c4_i32_16, %c0_i32_19] : memref<16x128xf32, #tpu.memory_space<vmem>> -> memref<1x128xf32, #tpu.memory_space<vmem>>
    %43 = tpu.memref_squeeze %42 : memref<1x128xf32, #tpu.memory_space<vmem>> -> memref<128xf32, #tpu.memory_space<vmem>>
    %44 = tpu.memref_slice %arg4[%c4_i32_17] : memref<8x!tpu.dma_semaphore, #tpu.memory_space<semaphore_mem>> -> memref<1x!tpu.dma_semaphore, #tpu.memory_space<semaphore_mem>>
    %45 = tpu.memref_squeeze %44 : memref<1x!tpu.dma_semaphore, #tpu.memory_space<semaphore_mem>> -> memref<!tpu.dma_semaphore, #tpu.memory_space<semaphore_mem>>
    tpu.enqueue_dma source(%41 : memref<128xf32, #tpu.memory_space<any>>) target(%43 : memref<128xf32, #tpu.memory_space<vmem>>) target_semaphore(%45 : memref<!tpu.dma_semaphore, #tpu.memory_space<semaphore_mem>>)
    %c5_i32 = arith.constant 5 : i32
    %46 = arith.addi %0, %c5_i32 : i32
    %47 = arith.index_cast %46 : i32 to index
    %48 = memref.load %arg1[%47] : memref<16xi32, #tpu.memory_space<smem>>
    %c5_i32_20 = arith.constant 5 : i32
    %c5_i32_21 = arith.constant 5 : i32
    %c0_i32_22 = arith.constant 0 : i32
    %49 = tpu.memref_slice %arg2[%48, %c0_i32_22] : memref<256x128xf32, #tpu.memory_space<any>> -> memref<1x128xf32, #tpu.memory_space<any>>
    %50 = tpu.memref_squeeze %49 : memref<1x128xf32, #tpu.memory_space<any>> -> memref<128xf32, #tpu.memory_space<any>>
    %c0_i32_23 = arith.constant 0 : i32
    %51 = tpu.memref_slice %arg3[%c5_i32_20, %c0_i32_23] : memref<16x128xf32, #tpu.memory_space<vmem>> -> memref<1x128xf32, #tpu.memory_space<vmem>>
    %52 = tpu.memref_squeeze %51 : memref<1x128xf32, #tpu.memory_space<vmem>> -> memref<128xf32, #tpu.memory_space<vmem>>
    %53 = tpu.memref_slice %arg4[%c5_i32_21] : memref<8x!tpu.dma_semaphore, #tpu.memory_space<semaphore_mem>> -> memref<1x!tpu.dma_semaphore, #tpu.memory_space<semaphore_mem>>
    %54 = tpu.memref_squeeze %53 : memref<1x!tpu.dma_semaphore, #tpu.memory_space<semaphore_mem>> -> memref<!tpu.dma_semaphore, #tpu.memory_space<semaphore_mem>>
    tpu.enqueue_dma source(%50 : memref<128xf32, #tpu.memory_space<any>>) target(%52 : memref<128xf32, #tpu.memory_space<vmem>>) target_semaphore(%54 : memref<!tpu.dma_semaphore, #tpu.memory_space<semaphore_mem>>)
    %c6_i32 = arith.constant 6 : i32
    %55 = arith.addi %0, %c6_i32 : i32
    %56 = arith.index_cast %55 : i32 to index
    %57 = memref.load %arg1[%56] : memref<16xi32, #tpu.memory_space<smem>>
    %c6_i32_24 = arith.constant 6 : i32
    %c6_i32_25 = arith.constant 6 : i32
    %c0_i32_26 = arith.constant 0 : i32
    %58 = tpu.memref_slice %arg2[%57, %c0_i32_26] : memref<256x128xf32, #tpu.memory_space<any>> -> memref<1x128xf32, #tpu.memory_space<any>>
    %59 = tpu.memref_squeeze %58 : memref<1x128xf32, #tpu.memory_space<any>> -> memref<128xf32, #tpu.memory_space<any>>
    %c0_i32_27 = arith.constant 0 : i32
    %60 = tpu.memref_slice %arg3[%c6_i32_24, %c0_i32_27] : memref<16x128xf32, #tpu.memory_space<vmem>> -> memref<1x128xf32, #tpu.memory_space<vmem>>
    %61 = tpu.memref_squeeze %60 : memref<1x128xf32, #tpu.memory_space<vmem>> -> memref<128xf32, #tpu.memory_space<vmem>>
    %62 = tpu.memref_slice %arg4[%c6_i32_25] : memref<8x!tpu.dma_semaphore, #tpu.memory_space<semaphore_mem>> -> memref<1x!tpu.dma_semaphore, #tpu.memory_space<semaphore_mem>>
    %63 = tpu.memref_squeeze %62 : memref<1x!tpu.dma_semaphore, #tpu.memory_space<semaphore_mem>> -> memref<!tpu.dma_semaphore, #tpu.memory_space<semaphore_mem>>
    tpu.enqueue_dma source(%59 : memref<128xf32, #tpu.memory_space<any>>) target(%61 : memref<128xf32, #tpu.memory_space<vmem>>) target_semaphore(%63 : memref<!tpu.dma_semaphore, #tpu.memory_space<semaphore_mem>>)
    %c7_i32 = arith.constant 7 : i32
    %64 = arith.addi %0, %c7_i32 : i32
    %65 = arith.index_cast %64 : i32 to index
    %66 = memref.load %arg1[%65] : memref<16xi32, #tpu.memory_space<smem>>
    %c7_i32_28 = arith.constant 7 : i32
    %c7_i32_29 = arith.constant 7 : i32
    %c0_i32_30 = arith.constant 0 : i32
    %67 = tpu.memref_slice %arg2[%66, %c0_i32_30] : memref<256x128xf32, #tpu.memory_space<any>> -> memref<1x128xf32, #tpu.memory_space<any>>
    %68 = tpu.memref_squeeze %67 : memref<1x128xf32, #tpu.memory_space<any>> -> memref<128xf32, #tpu.memory_space<any>>
    %c0_i32_31 = arith.constant 0 : i32
    %69 = tpu.memref_slice %arg3[%c7_i32_28, %c0_i32_31] : memref<16x128xf32, #tpu.memory_space<vmem>> -> memref<1x128xf32, #tpu.memory_space<vmem>>
    %70 = tpu.memref_squeeze %69 : memref<1x128xf32, #tpu.memory_space<vmem>> -> memref<128xf32, #tpu.memory_space<vmem>>
    %71 = tpu.memref_slice %arg4[%c7_i32_29] : memref<8x!tpu.dma_semaphore, #tpu.memory_space<semaphore_mem>> -> memref<1x!tpu.dma_semaphore, #tpu.memory_space<semaphore_mem>>
    %72 = tpu.memref_squeeze %71 : memref<1x!tpu.dma_semaphore, #tpu.memory_space<semaphore_mem>> -> memref<!tpu.dma_semaphore, #tpu.memory_space<semaphore_mem>>
    tpu.enqueue_dma source(%68 : memref<128xf32, #tpu.memory_space<any>>) target(%70 : memref<128xf32, #tpu.memory_space<vmem>>) target_semaphore(%72 : memref<!tpu.dma_semaphore, #tpu.memory_space<semaphore_mem>>)
    %c0_i32_32 = arith.constant 0 : i32
    %c16_i32_33 = arith.constant 16 : i32
    %73 = arith.addi %c0_i32_32, %c16_i32_33 : i32
    %c1_i32_34 = arith.constant 1 : i32
    scf.for %arg5 = %c0_i32_32 to %73 step %c1_i32_34  : i32 {
      %c1_i32_36 = arith.constant 1 : i32
      %74 = arith.muli %arg5, %c1_i32_36 : i32
      %c0_i32_37 = arith.constant 0 : i32
      %75 = arith.addi %c0_i32_37, %74 : i32
      %c8_i32 = arith.constant 8 : i32
      %c0_i32_38 = arith.constant 0 : i32
      %76 = arith.cmpi eq, %c8_i32, %c0_i32_38 : i32
      %c1_i32_39 = arith.constant 1 : i32
      %77 = arith.select %76, %c1_i32_39, %c8_i32 : i32
      %78 = arith.remsi %75, %77 : i32
      %c0_i32_40 = arith.constant 0 : i32
      %79 = arith.cmpi ne, %78, %c0_i32_40 : i32
      %c0_i32_41 = arith.constant 0 : i32
      %80 = arith.cmpi slt, %78, %c0_i32_41 : i32
      %c0_i32_42 = arith.constant 0 : i32
      %81 = arith.cmpi slt, %77, %c0_i32_42 : i32
      %82 = arith.xori %80, %81 : i1
      %83 = arith.andi %82, %79 : i1
      %84 = arith.addi %78, %77 : i32
      %85 = arith.select %83, %84, %78 : i32
      %c0_i32_43 = arith.constant 0 : i32
      %c0_i32_44 = arith.constant 0 : i32
      %86 = tpu.memref_slice %arg2[%c0_i32_43, %c0_i32_44] : memref<256x128xf32, #tpu.memory_space<any>> -> memref<1x128xf32, #tpu.memory_space<any>>
      %87 = tpu.memref_squeeze %86 : memref<1x128xf32, #tpu.memory_space<any>> -> memref<128xf32, #tpu.memory_space<any>>
      %c0_i32_45 = arith.constant 0 : i32
      %88 = tpu.memref_slice %arg3[%75, %c0_i32_45] : memref<16x128xf32, #tpu.memory_space<vmem>> -> memref<1x128xf32, #tpu.memory_space<vmem>>
      %89 = tpu.memref_squeeze %88 : memref<1x128xf32, #tpu.memory_space<vmem>> -> memref<128xf32, #tpu.memory_space<vmem>>
      %90 = tpu.memref_slice %arg4[%85] : memref<8x!tpu.dma_semaphore, #tpu.memory_space<semaphore_mem>> -> memref<1x!tpu.dma_semaphore, #tpu.memory_space<semaphore_mem>>
      %91 = tpu.memref_squeeze %90 : memref<1x!tpu.dma_semaphore, #tpu.memory_space<semaphore_mem>> -> memref<!tpu.dma_semaphore, #tpu.memory_space<semaphore_mem>>
      tpu.wait_dma2 semaphore(%91 : memref<!tpu.dma_semaphore, #tpu.memory_space<semaphore_mem>>) src(%87 : memref<128xf32, #tpu.memory_space<any>>) dst(%89 : memref<128xf32, #tpu.memory_space<vmem>>)
      %c8_i32_46 = arith.constant 8 : i32
      %92 = arith.addi %75, %c8_i32_46 : i32
      %c16_i32_47 = arith.constant 16 : i32
      %93 = arith.cmpi slt, %92, %c16_i32_47 : i32
      %94 = arith.extui %93 : i1 to i32
      %c0_i32_48 = arith.constant 0 : i32
      %95 = arith.cmpi ne, %94, %c0_i32_48 : i32
      scf.if %95 {
        %c8_i32_49 = arith.constant 8 : i32
        %96 = arith.addi %75, %c8_i32_49 : i32
        %97 = arith.addi %0, %96 : i32
        %98 = arith.index_cast %97 : i32 to index
        %99 = memref.load %arg1[%98] : memref<16xi32, #tpu.memory_space<smem>>
        %c8_i32_50 = arith.constant 8 : i32
        %c0_i32_51 = arith.constant 0 : i32
        %100 = arith.cmpi eq, %c8_i32_50, %c0_i32_51 : i32
        %c1_i32_52 = arith.constant 1 : i32
        %101 = arith.select %100, %c1_i32_52, %c8_i32_50 : i32
        %102 = arith.remsi %96, %101 : i32
        %c0_i32_53 = arith.constant 0 : i32
        %103 = arith.cmpi ne, %102, %c0_i32_53 : i32
        %c0_i32_54 = arith.constant 0 : i32
        %104 = arith.cmpi slt, %102, %c0_i32_54 : i32
        %c0_i32_55 = arith.constant 0 : i32
        %105 = arith.cmpi slt, %101, %c0_i32_55 : i32
        %106 = arith.xori %104, %105 : i1
        %107 = arith.andi %106, %103 : i1
        %108 = arith.addi %102, %101 : i32
        %109 = arith.select %107, %108, %102 : i32
        %c0_i32_56 = arith.constant 0 : i32
        %110 = tpu.memref_slice %arg2[%99, %c0_i32_56] : memref<256x128xf32, #tpu.memory_space<any>> -> memref<1x128xf32, #tpu.memory_space<any>>
        %111 = tpu.memref_squeeze %110 : memref<1x128xf32, #tpu.memory_space<any>> -> memref<128xf32, #tpu.memory_space<any>>
        %c0_i32_57 = arith.constant 0 : i32
        %112 = tpu.memref_slice %arg3[%96, %c0_i32_57] : memref<16x128xf32, #tpu.memory_space<vmem>> -> memref<1x128xf32, #tpu.memory_space<vmem>>
        %113 = tpu.memref_squeeze %112 : memref<1x128xf32, #tpu.memory_space<vmem>> -> memref<128xf32, #tpu.memory_space<vmem>>
        %114 = tpu.memref_slice %arg4[%109] : memref<8x!tpu.dma_semaphore, #tpu.memory_space<semaphore_mem>> -> memref<1x!tpu.dma_semaphore, #tpu.memory_space<semaphore_mem>>
        %115 = tpu.memref_squeeze %114 : memref<1x!tpu.dma_semaphore, #tpu.memory_space<semaphore_mem>> -> memref<!tpu.dma_semaphore, #tpu.memory_space<semaphore_mem>>
        tpu.enqueue_dma source(%111 : memref<128xf32, #tpu.memory_space<any>>) target(%113 : memref<128xf32, #tpu.memory_space<vmem>>) target_semaphore(%115 : memref<!tpu.dma_semaphore, #tpu.memory_space<semaphore_mem>>)
      } else {
      }
    }
    %c16_i32_35 = arith.constant 16 : i32
    return
  }
  func.func @transform_1(%arg0: i32, %arg1: memref<16xi32, #tpu.memory_space<smem>>) -> (i32, i32) {
    %c0_i32 = arith.constant 0 : i32
    %c0_i32_0 = arith.constant 0 : i32
    return %arg0, %c0_i32 : i32, i32
  }
}

</mosaic_0001>

<bundles_post_ra>
// kernel: tpu_custom_call.1
= control target key start
LH: loop header
LB: loop body
LE: loop exit
PB: predicated region body
PF: predicated region fallthrough
CT: control target
= control target key end

     0   :  { %s621_s12 = smov [#allocation4]   ;;  %s790_s0 = inlined_call_operand.hbm [shape: s32[16], index: 0, kind: input, shape index: {}]   ;;  %s791_s1 = inlined_call_operand.hbm [shape: f32[256,128], index: 1, kind: input, shape index: {}]   ;;  %s792_s2 = inlined_call_operand.hbm [shape: f32[16,128], index: 2, kind: output, shape index: {}]  }
   0x1   :  { %s8_s11 = sshll.u32 %s790_s0, 4  ;;  %s9_s11 = int_to_ptr.hbm [resolvable:$true] %s8_s11 }
   0x2   :  { %11 = dma.hbm_to_smem %s9_s11, 16, %s621_s12, [#allocation3] }
   0x3   :  { %611 = dma.done.wait [#allocation3], 16 }
   0x4   :  { %612 = vsyncadd [#allocation3], 4294967280 }
   0x5   :  { %14 = sfence }
   0x6   :  { %15 = vsyncpa [#allocation6], 0  ;;  %s17_s13 = sld [smem:[#allocation4]]  ;;  %s622_s14 = smov [#allocation5]  }
   0x7   :  { %s651_s15 = sshll.u32 %s622_s14, 4  ;;  %s305_s16 = sld [smem:[#allocation4 + $0x1]]  ;;  %s29_s15 = int_to_ptr.vmem [resolvable:$true] %s651_s15 }
   0x8   :  { %s623_s17 = smov [#allocation5 + $0x1]   ;;  %s656_s19 = sld [smem:[#allocation4 + $0x2]] }
   0x9   :  { %s654_s18 = sshll.u32 %s623_s17, 4  ;;  %s624_s0 = smov [#allocation5 + $0x2]   ;;  %s47_s18 = int_to_ptr.vmem [resolvable:$true] %s654_s18 }
   0xa   :  { %s659_s20 = sshll.u32 %s624_s0, 4  ;;  %s661_s21 = sld [smem:[#allocation4 + $0x3]]  ;;  %s65_s20 = int_to_ptr.vmem [resolvable:$true] %s659_s20 }
   0xb   :  { %s673_s6 = scalar_lea.hbm %s791_s1, 256 }
   0xc   :  { %s18_s24 = scalar_lea.hbm %s791_s1, %s17_s13 }
   0xd   :  { %s26_s25 = sshll.u32 %s18_s24, 4  ;;  %s34_s28 = scalar_lea.hbm %s791_s1, %s305_s16  ;;  %s27_s25 = int_to_ptr.hbm [resolvable:$true] %s26_s25 }
   0xe   :  { %s44_s29 = sshll.u32 %s34_s28, 4  ;;  %s363_s30 = sshra.s32 %s27_s25, 4  ;;  %s364_s30 = int_to_ptr.hbm [resolvable:$true] %s363_s30  ;;  %s45_s29 = int_to_ptr.hbm [resolvable:$true] %s44_s29 }
   0xf   :  { %s365_s3 = scalar_lea.hbm %s364_s30, 1  ;;  %p368_p1 = scmp.lt.s32.totalorder %s364_s30, %s791_s1 }
  0x10   :  { %p366_p0 = scmp.ne.s32.totalorder %s364_s30, %s365_s3  ;;  %p369_p2 = scmp.lt.s32.totalorder %s673_s6, %s365_s3 }
  0x12   :  { %p370_p3 = por %p369_p2, %p368_p1 }
  0x14   :  { %p371_p4 = pnand %p370_p3, %p366_p0 }
  0x16   :  { %374 = shalt.err (!%p371_p4)  }
  0x17   :  { %31 = dma.hbm_to_vmem [thread:$0]  %s27_s25, 16, %s29_s15, [#allocation2] }
  0x18   :  { %s52_s11 = scalar_lea.hbm %s791_s1, %s656_s19  ;;  %s387_s12 = sshra.s32 %s45_s29, 4  ;;  %s388_s12 = int_to_ptr.hbm [resolvable:$true] %s387_s12 }
  0x19   :  { %s389_s13 = scalar_lea.hbm %s388_s12, 1  ;;  %p392_p6 = scmp.lt.s32.totalorder %s388_s12, %s791_s1 }
  0x1a   :  { %p390_p5 = scmp.ne.s32.totalorder %s388_s12, %s389_s13  ;;  %p393_p7 = scmp.lt.s32.totalorder %s673_s6, %s389_s13 }
  0x1c   :  { %p394_p8 = por %p393_p7, %p392_p6 }
  0x1e   :  { %p395_p9 = pnand %p394_p8, %p390_p5 }
  0x20   :  { %398 = shalt.err (!%p395_p9)  }
  0x21   :  { %49 = dma.hbm_to_vmem [thread:$0]  %s45_s29, 16, %s47_s18, [#allocation2 + $0x1] }
  0x22   :  { %s62_s17 = sshll.u32 %s52_s11, 4  ;;  %s70_s22 = scalar_lea.hbm %s791_s1, %s661_s21  ;;  %s63_s17 = int_to_ptr.hbm [resolvable:$true] %s62_s17 }
  0x23   :  { %s80_s23 = sshll.u32 %s70_s22, 4  ;;  %s411_s24 = sshra.s32 %s63_s17, 4  ;;  %s412_s24 = int_to_ptr.hbm [resolvable:$true] %s411_s24  ;;  %s81_s23 = int_to_ptr.hbm [resolvable:$true] %s80_s23 }
  0x24   :  { %s413_s25 = scalar_lea.hbm %s412_s24, 1  ;;  %p416_p11 = scmp.lt.s32.totalorder %s412_s24, %s791_s1 }
  0x25   :  { %p414_p10 = scmp.ne.s32.totalorder %s412_s24, %s413_s25  ;;  %p417_p12 = scmp.lt.s32.totalorder %s673_s6, %s413_s25 }
  0x27   :  { %p418_p13 = por %p417_p12, %p416_p11 }
  0x29   :  { %p419_p0 = pnand %p418_p13, %p414_p10 }
  0x2b   :  { %422 = shalt.err (!%p419_p0)  }
  0x2c   :  { %67 = dma.hbm_to_vmem [thread:$0]  %s63_s17, 16, %s65_s20, [#allocation2 + $0x2] }
  0x2d   :  { %s625_s18 = smov [#allocation5 + $0x3]   ;;  %s308_s28 = sld [smem:[#allocation4 + $0x4]] }
  0x2e   :  { %s82_s21 = sshll.u32 %s625_s18, 4  ;;  %s435_s29 = sshra.s32 %s81_s23, 4  ;;  %s83_s21 = int_to_ptr.vmem [resolvable:$true] %s82_s21  ;;  %s436_s29 = int_to_ptr.hbm [resolvable:$true] %s435_s29 }
  0x2f   :  { %s437_s30 = scalar_lea.hbm %s436_s29, 1  ;;  %p440_p2 = scmp.lt.s32.totalorder %s436_s29, %s791_s1 }
  0x30   :  { %p438_p1 = scmp.ne.s32.totalorder %s436_s29, %s437_s30  ;;  %p441_p3 = scmp.lt.s32.totalorder %s673_s6, %s437_s30 }
  0x32   :  { %p442_p4 = por %p441_p3, %p440_p2 }
  0x34   :  { %p443_p5 = pnand %p442_p4, %p438_p1 }
  0x36   :  { %446 = shalt.err (!%p443_p5)  }
  0x37   :  { %85 = dma.hbm_to_vmem [thread:$0]  %s81_s23, 16, %s83_s21, [#allocation2 + $0x3] }
  0x38   :  { %s626_s5 = smov [#allocation5 + $0x4]   ;;  %s309_s7 = sld [smem:[#allocation4 + $0x5]] }
  0x39   :  { %s100_s20 = sshll.u32 %s626_s5, 4  ;;  %s627_s8 = smov [#allocation5 + $0x5]   ;;  %s101_s20 = int_to_ptr.vmem [resolvable:$true] %s100_s20 }
  0x3a   :  { %s705_s9 = sshll.u32 %s627_s8, 4  ;;  %s310_s10 = sld [smem:[#allocation4 + $0x6]]  ;;  %s119_s9 = int_to_ptr.vmem [resolvable:$true] %s705_s9 }
  0x3b   :  { %s88_s13 = scalar_lea.hbm %s791_s1, %s308_s28  ;;  %s628_s16 = smov [#allocation5 + $0x6]  }
  0x3c   :  { %s98_s14 = sshll.u32 %s88_s13, 4  ;;  %s711_s17 = sshll.u32 %s628_s16, 4  ;;  %s99_s14 = int_to_ptr.hbm [resolvable:$true] %s98_s14  ;;  %s137_s17 = int_to_ptr.vmem [resolvable:$true] %s711_s17 }
  0x3d   :  { %s459_s0 = sshra.s32 %s99_s14, 4  ;;  %s460_s0 = int_to_ptr.hbm [resolvable:$true] %s459_s0 }
  0x3e   :  { %s461_s19 = scalar_lea.hbm %s460_s0, 1  ;;  %p464_p7 = scmp.lt.s32.totalorder %s460_s0, %s791_s1 }
  0x3f   :  { %p462_p6 = scmp.ne.s32.totalorder %s460_s0, %s461_s19  ;;  %p465_p8 = scmp.lt.s32.totalorder %s673_s6, %s461_s19 }
  0x41   :  { %p466_p9 = por %p465_p8, %p464_p7 }
  0x43   :  { %p467_p10 = pnand %p466_p9, %p462_p6 }
  0x45   :  { %470 = shalt.err (!%p467_p10)  }
  0x46   :  { %103 = dma.hbm_to_vmem [thread:$0]  %s99_s14, 16, %s101_s20, [#allocation2 + $0x4] }
  0x47   :  { %s106_s26 = scalar_lea.hbm %s791_s1, %s309_s7  ;;  %s124_s28 = scalar_lea.hbm %s791_s1, %s310_s10 }
  0x48   :  { %s116_s27 = sshll.u32 %s106_s26, 4  ;;  %s134_s29 = sshll.u32 %s124_s28, 4  ;;  %s117_s27 = int_to_ptr.hbm [resolvable:$true] %s116_s27  ;;  %s135_s29 = int_to_ptr.hbm [resolvable:$true] %s134_s29 }
  0x49   :  { %s483_s30 = sshra.s32 %s117_s27, 4  ;;  %s484_s30 = int_to_ptr.hbm [resolvable:$true] %s483_s30 }
  0x4a   :  { %s485_s3 = scalar_lea.hbm %s484_s30, 1  ;;  %p488_p12 = scmp.lt.s32.totalorder %s484_s30, %s791_s1 }
  0x4b   :  { %p486_p11 = scmp.ne.s32.totalorder %s484_s30, %s485_s3  ;;  %p489_p13 = scmp.lt.s32.totalorder %s673_s6, %s485_s3 }
  0x4d   :  { %p490_p0 = por %p489_p13, %p488_p12 }
  0x4f   :  { %p491_p1 = pnand %p490_p0, %p486_p11 }
  0x51   :  { %494 = shalt.err (!%p491_p1)  }
  0x52   :  { %121 = dma.hbm_to_vmem [thread:$0]  %s117_s27, 16, %s119_s9, [#allocation2 + $0x5] }
  0x53   :  { %s311_s20 = sld [smem:[#allocation4 + $0x7]]  ;;  %s507_s7 = sshra.s32 %s135_s29, 4  ;;  %s508_s7 = int_to_ptr.hbm [resolvable:$true] %s507_s7 }
  0x54   :  { %s509_s8 = scalar_lea.hbm %s508_s7, 1  ;;  %p512_p3 = scmp.lt.s32.totalorder %s508_s7, %s791_s1 }
  0x55   :  { %p510_p2 = scmp.ne.s32.totalorder %s508_s7, %s509_s8  ;;  %p513_p4 = scmp.lt.s32.totalorder %s673_s6, %s509_s8 }
  0x57   :  { %p514_p5 = por %p513_p4, %p512_p3 }
  0x59   :  { %p515_p6 = pnand %p514_p5, %p510_p2 }
  0x5b   :  { %518 = shalt.err (!%p515_p6)  }
  0x5c   :  { %139 = dma.hbm_to_vmem [thread:$0]  %s135_s29, 16, %s137_s17, [#allocation2 + $0x6] }
  0x5d   :  { %s629_s12 = smov [#allocation5 + $0x7]   ;;  %s142_s16 = scalar_lea.hbm %s791_s1, %s311_s20 }
  0x5e   :  { %s154_s13 = sshll.u32 %s629_s12, 4  ;;  %s152_s0 = sshll.u32 %s142_s16, 4  ;;  %s155_s13 = int_to_ptr.vmem [resolvable:$true] %s154_s13  ;;  %s153_s0 = int_to_ptr.hbm [resolvable:$true] %s152_s0 }
  0x5f   :  { %s531_s19 = sshra.s32 %s153_s0, 4  ;;  %s532_s19 = int_to_ptr.hbm [resolvable:$true] %s531_s19 }
  0x60   :  { %s533_s22 = scalar_lea.hbm %s532_s19, 1  ;;  %p536_p8 = scmp.lt.s32.totalorder %s532_s19, %s791_s1 }
  0x61   :  { %p534_p7 = scmp.ne.s32.totalorder %s532_s19, %s533_s22  ;;  %p537_p9 = scmp.lt.s32.totalorder %s673_s6, %s533_s22 }
  0x63   :  { %p538_p10 = por %p537_p9, %p536_p8 }
  0x65   :  { %p539_p11 = pnand %p538_p10, %p534_p7 }
  0x67   :  { %542 = shalt.err (!%p539_p11)  }
  0x68   :  { %157 = dma.hbm_to_vmem [thread:$0]  %s153_s0, 16, %s155_s13, [#allocation2 + $0x7] }
  0x69   :  { %s741_s17 = smov 0  }
  0x6a LB: > { %p164_p12 = scmp.lt.s32.totalorder %s619_s17, 0  ;;  %s165_s25 = ssub.s32 0, %s619_s17  ;;  %s619_s17 = sphi %s741_s17, %s163_s17  }
  0x6b   : > { %s312_s26 = smin.u32 %s619_s17, %s165_s25 }
  0x6c   : > { %s167_s27 = sand.u32 7, %s312_s26  }
  0x6d   : > { %s168_s18 = ssub.s32 0, %s167_s27 }
  0x6e   : > { %s794_s18 = smov (!%p164_p12, %s168_s18), %s167_s27 }
  0x6f   : > { %p314_p13 = scmp.lt.s32.totalorder %s794_s18, 0  ;;  %s174_s21 = sadd.s32 8, %s794_s18 }
  0x71   : > { %s796_s21 = smov (!%p314_p13, %s174_s21), %s794_s18 }
  0x72   : > { %s176_s28 = scalar_lea.sflag [#allocation2], %s796_s21 }
  0x73   : > { %613 = dma.done.wait %s176_s28, 16 }
  0x74   : > { %614 = vsyncadd %s176_s28, 4294967280  ;;  %s750_s29 = sadd.s32 8, %s619_s17  ;;  %s297_s10 = scalar_lea.vmem [#allocation5], %s619_s17 }
  0x75   : > { %p331_p0 = scmp.lt.s32.totalorder %s750_s29, 16  ;;  %p186_p1 = scmp.lt.s32.totalorder %s750_s29, 0 }
  0x76   : > { %s187_s30 = ssub.s32 0, %s750_s29  ;;  %s298_s11 = scalar_lea.vmem %s297_s10, 8 [#allocation5] }
  0x77   : > { %s328_s3 = scalar_select %p331_p0, [#allocation4], [#allocation27] }
  0x78   : > { %s329_s4 = scalar_select %p331_p0, %s750_s29, 0 }
  0x79   : > { %s316_s5 = smin.u32 %s187_s30, %s750_s29  ;;  %s210_s12 = sshll.u32 %s298_s11, 4  ;;  %s211_s12 = int_to_ptr.vmem [resolvable:$true] %s210_s12 }
  0x7a   : > { %s185_s20 = sld [smem:[%s328_s3 + %s329_s4]]  ;;  %s189_s7 = sand.u32 7, %s316_s5  }
  0x7b   : > { %s190_s8 = ssub.s32 0, %s189_s7 }
  0x7c   : > { %s798_s8 = smov (!%p186_p1, %s190_s8), %s189_s7 }
  0x7d   : > { %p318_p2 = scmp.lt.s32.totalorder %s798_s8, 0  ;;  %s196_s16 = sadd.s32 8, %s798_s8 }
  0x7f   : > { %s800_s16 = smov (!%p318_p2, %s196_s16), %s798_s8 }
  0x80   : > { %s198_s9 = scalar_lea.hbm %s791_s1, %s185_s20  ;;  %s200_s19 = scalar_lea.sflag [#allocation2], %s800_s16 }
  0x81   : > { %s765_s0 = sshll.u32 %s198_s9, 4  ;;  %s209_s0 = int_to_ptr.hbm [resolvable:$true] %s765_s0 }
  0x82   : > { %s555_s22 = sshra.s32 %s209_s0, 4  ;;  %s556_s22 = int_to_ptr.hbm [resolvable:$true] %s555_s22 }
  0x83   : > { %s557_s23 = scalar_lea.hbm %s556_s22, 1  ;;  %p562_p6 = scmp.lt.s32.totalorder %s556_s22, %s791_s1 }
  0x84   : > { %p558_p3 = scmp.ne.s32.totalorder %s556_s22, %s557_s23  ;;  %p563_p7 = scmp.lt.s32.totalorder %s673_s6, %s557_s23 }
  0x86   : > { %p559_p4 = pnand %p558_p3, %p331_p0  ;;  %p564_p8 = por %p563_p7, %p562_p6 }
  0x88   : > { %p560_p5 = pneg %p559_p4 }
  0x8a   : > { %p565_p9 = pnand %p564_p8, %p560_p5 }
  0x8c   : > { %568 = shalt.err (!%p565_p9)  }
  0x8d   : > { %s569_s26 = sshra.s32 %s211_s12, 4  ;;  %s630_s18 = smov [#allocation5]   ;;  %s570_s26 = int_to_ptr.vmem [resolvable:$true] %s569_s26 }
  0x8e   : > { %s571_s27 = scalar_lea.vmem %s570_s26, 1  ;;  %s575_s21 = scalar_lea.vmem %s630_s18, 16 }
  0x8f   : > { %p572_p10 = scmp.ne.s32.totalorder %s570_s26, %s571_s27  ;;  %p576_p13 = scmp.lt.s32.totalorder %s570_s26, [#allocation5] }
  0x90   : > { %p577_p1 = scmp.lt.s32.totalorder %s575_s21, %s571_s27 }
  0x91   : > { %p573_p11 = pnand %p572_p10, %p331_p0 }
  0x92   : > { %p578_p2 = por %p577_p1, %p576_p13 }
  0x93   : > { %p574_p12 = pneg %p573_p11 }
  0x95   : > { %p579_p3 = pnand %p578_p2, %p574_p12 }
  0x97   : > { %582 = shalt.err (!%p579_p3)  }
  0x98   : > { %330 = dma.hbm_to_vmem [thread:$0]  (%p331_p0), %s209_s0, 16, %s211_s12, %s200_s19 }
  0x99   : > { %s163_s17 = sadd.s32 1, %s619_s17  }
  0x9a   : > { %p160_p4 = scmp.ge.s32.totalorder %s163_s17, 16  }
  0x9b   :  { %s220_s3 = sshll.u32 (%p160_p4), %s792_s2, 4  ;;  %s631_s4 = smov (%p160_p4), 128   ;;  %s221_s3 = int_to_ptr.hbm [resolvable:$true] %s220_s3 }
  0x9c   :  { %162 = sbr.rel (!%p160_p4) target bundleno = 106 (0x6a), region = 100  ;;  %s632_s5 = smov (%p160_p4), 8  }
  0x9d   :  { %226 = dma.vmem_to_hbm [thread:$0]  (%p160_p4), %s29_s15, 256, %s221_s3, [#allocation6], %s631_s4, %s631_s4, %s632_s5  }
  0xa1   :  { %615 = dma.done.wait [#allocation6], 256  }
  0xa2   :  { %616 = vsyncadd [#allocation6], 4294967040 }
  0xa3   :  { %231 = vsyncpa [#allocation6], 1 }
  0xa4   :  { %232 = vsyncmov [#allocation2] }
  0xa7   :  { %s233_s29 = vpop.sfrf %232 }
  0xa8   :  { %p319_p0 = scmp.ne.s32.totalorder %s233_s29, 0 }
  0xaa   :  { %237 = shalt.err (%p319_p0)  }
  0xab   :  { %239 = vsyncmov [#allocation2 + $0x1] }
  0xae   :  { %s240_s17 = vpop.sfrf %239 }
  0xaf   :  { %p320_p5 = scmp.ne.s32.totalorder %s240_s17, 0 }
  0xb1   :  { %244 = shalt.err (%p320_p5)  }
  0xb2   :  { %246 = vsyncmov [#allocation2 + $0x2] }
  0xb5   :  { %s247_s1 = vpop.sfrf %246 }
  0xb6   :  { %p321_p6 = scmp.ne.s32.totalorder %s247_s1, 0 }
  0xb8   :  { %251 = shalt.err (%p321_p6)  }
  0xb9   :  { %253 = vsyncmov [#allocation2 + $0x3] }
  0xbc   :  { %s254_s2 = vpop.sfrf %253 }
  0xbd   :  { %p322_p7 = scmp.ne.s32.totalorder %s254_s2, 0 }
  0xbf   :  { %258 = shalt.err (%p322_p7)  }
  0xc0   :  { %260 = vsyncmov [#allocation2 + $0x4] }
  0xc3   :  { %s261_s15 = vpop.sfrf %260 }
  0xc4   :  { %p323_p8 = scmp.ne.s32.totalorder %s261_s15, 0 }
  0xc6   :  { %265 = shalt.err (%p323_p8)  }
  0xc7   :  { %267 = vsyncmov [#allocation2 + $0x5] }
  0xca   :  { %s268_s6 = vpop.sfrf %267 }
  0xcb   :  { %p324_p9 = scmp.ne.s32.totalorder %s268_s6, 0 }
  0xcd   :  { %272 = shalt.err (%p324_p9)  }
  0xce   :  { %274 = vsyncmov [#allocation2 + $0x6] }
  0xd1   :  { %s275_s20 = vpop.sfrf %274 }
  0xd2   :  { %p325_p10 = scmp.ne.s32.totalorder %s275_s20, 0 }
  0xd4   :  { %279 = shalt.err (%p325_p10)  }
  0xd5   :  { %281 = vsyncmov [#allocation2 + $0x7] }
  0xd8   :  { %s282_s7 = vpop.sfrf %281 }
  0xd9   :  { %p326_p11 = scmp.ne.s32.totalorder %s282_s7, 0 }
  0xdb   :  { %286 = shalt.err (%p326_p11)  }

</bundles_post_ra>
